<compile_context>
chip_gen: v7x
topology: tpu7x:2x2x1
jax: 0.10.0
libtpu: 0.0.40
codegen_flags: <defaults>
</compile_context>

<pallas_src>
import functools

import jax
import jax.numpy as jnp
from jax import lax
from jax.experimental import pallas as pl
from jax.experimental.pallas import tpu as pltpu


def _round_up(x, m):
    return ((x + m - 1) // m) * m


def _ntxent_kernel(img_ref, cap_ref, pos_ref, loss_ref,
                   img_scr, diag_scr, m_scr, l_scr,
                   *, scale, m_valid, tm, mask_cols):
    # img_ref : [TN, D]  image tile (resident across the caption axis)
    # cap_ref : [TM, D]  caption tile (streamed)
    # pos_ref : [TN, D]  caption rows aligned with this image tile (positives)
    # loss_ref: [TN, 1]  per-image loss (written on the last caption tile)
    j = pl.program_id(1)

    @pl.when(j == 0)
    def _init():
        imgs = img_ref[...]
        pos_f = pos_ref[...].astype(jnp.float32)
        img_f = imgs.astype(jnp.float32)
        # F.normalize semantics: x / max(||x||, eps), eps = 1e-12  (eps^2 under max)
        img_inv = lax.rsqrt(
            jnp.maximum(jnp.sum(img_f * img_f, axis=-1, keepdims=True), 1e-24))
        pos_inv = lax.rsqrt(
            jnp.maximum(jnp.sum(pos_f * pos_f, axis=-1, keepdims=True), 1e-24))
        # Fold the temperature scale into the normalized image operand.
        img_s = imgs * (img_inv * scale).astype(imgs.dtype)
        img_scr[...] = img_s
        pos_n = pos_f * pos_inv
        # labels == arange(N): positive score for image i is scale*<img_n_i, cap_n_i>
        diag_scr[...] = jnp.sum(img_s.astype(jnp.float32) * pos_n,
                                axis=-1, keepdims=True)
        m_scr[...] = jnp.full_like(m_scr, -1e30)
        l_scr[...] = jnp.zeros_like(l_scr)

    cap = cap_ref[...]
    cap_f = cap.astype(jnp.float32)
    cap_inv = lax.rsqrt(
        jnp.maximum(jnp.sum(cap_f * cap_f, axis=-1, keepdims=True), 1e-24))
    cap_n = cap * cap_inv.astype(cap.dtype)

    # [TN, TM] scaled cosine scores; contraction on the last dim of both
    # operands feeds the MXU natively (no transpose).
    scores = lax.dot_general(
        img_scr[...], cap_n,
        dimension_numbers=(((1,), (1,)), ((), ())),
        preferred_element_type=jnp.float32)

    if mask_cols:
        col = lax.broadcasted_iota(jnp.int32, scores.shape, 1) + j * tm
        scores = jnp.where(col < m_valid, scores, -1e30)

    # Online (flash-style) log-sum-exp over the caption axis.
    row_max = jnp.max(scores, axis=-1, keepdims=True)
    m_prev = m_scr[...]
    m_new = jnp.maximum(m_prev, row_max)
    alpha = jnp.exp(m_prev - m_new)
    l_scr[...] = alpha * l_scr[...] + jnp.sum(jnp.exp(scores - m_new),
                                              axis=-1, keepdims=True)
    m_scr[...] = m_new

    @pl.when(j == pl.num_programs(1) - 1)
    def _finalize():
        lse = m_scr[...] + jnp.log(l_scr[...])
        loss_ref[...] = lse - diag_scr[...]


def ntxent_loss_triplet(images, captions, scale: float = 20.0,
                        block_n: int | None = None,
                        block_m: int | None = None):
    """images: [N, D], captions: [M, D] (M >= N, caption i is the positive
    for image i)  ->  scalar f32 loss (mean-reduced cross-entropy)."""
    N, D = images.shape
    M, Dc = captions.shape
    assert Dc == D and M >= N, "requires same dim and M >= N (labels=arange(N))"

    TN = block_n or min(_round_up(N, 8), 256)
    TM = block_m or min(_round_up(M, 8), 512)
    N_pad = _round_up(N, TN)
    M_pad = _round_up(M, TM)

    img_p = images if N_pad == N else jnp.pad(images, ((0, N_pad - N), (0, 0)))
    cap_p = captions if M_pad == M else jnp.pad(captions, ((0, M_pad - M), (0, 0)))
    # Positive captions aligned with the image tiles (caption i <-> image i).
    pos = captions[:N]
    pos_p = pos if N_pad == N else jnp.pad(pos, ((0, N_pad - N), (0, 0)))

    grid = (N_pad // TN, M_pad // TM)
    elt = images.dtype.itemsize
    vmem_bytes = (4 * TN * D * elt          # img + pos, double-buffered
                  + 2 * TM * D * elt        # caption tile, double-buffered
                  + TN * D * elt            # img_scr
                  + 8 * TN * TM * 4         # scores / exp temporaries headroom
                  + 16 * TN * 4)
    vmem_limit = int(min(max(2 * vmem_bytes, 8 << 20) + (4 << 20), 64 << 20))

    cost = pl.CostEstimate(
        flops=2 * N_pad * M_pad * D + 6 * (N_pad + M_pad) * D,
        transcendentals=N_pad * M_pad + 2 * N_pad + M_pad,
        bytes_accessed=(2 * N_pad + M_pad) * D * elt + N_pad * 4)

    kernel = functools.partial(_ntxent_kernel, scale=float(scale),
                               m_valid=M, tm=TM, mask_cols=(M_pad != M))

    per_image = pl.pallas_call(
        kernel,
        out_shape=jax.ShapeDtypeStruct((N_pad, 1), jnp.float32),
        grid_spec=pltpu.PrefetchScalarGridSpec(
            num_scalar_prefetch=0,
            grid=grid,
            in_specs=[
                pl.BlockSpec((TN, D), lambda i, j: (i, 0)),   # images (resident)
                pl.BlockSpec((TM, D), lambda i, j: (j, 0)),   # captions (streamed)
                pl.BlockSpec((TN, D), lambda i, j: (i, 0)),   # positive captions
            ],
            out_specs=pl.BlockSpec((TN, 1), lambda i, j: (i, 0)),
            scratch_shapes=[
                pltpu.VMEM((TN, D), images.dtype),   # scaled+normalized images
                pltpu.VMEM((TN, 1), jnp.float32),    # diag (positive scores)
                pltpu.VMEM((TN, 1), jnp.float32),    # running max
                pltpu.VMEM((TN, 1), jnp.float32),    # running sum
            ]),
        compiler_params=pltpu.CompilerParams(
            dimension_semantics=("parallel", "arbitrary"),
            vmem_limit_bytes=vmem_limit),
        cost_estimate=cost,
    )(img_p, cap_p, pos_p)

    return jnp.mean(per_image[:N, 0])


# ----------------------------------------------------------------------------
# Synthetic "model": deterministic linear projection producing the
# 'multimodal_embedding'.  This is glue (parameter setup), kept in plain JAX.
# TODO(synk): the wrapped `model` is arbitrary user code in the original
# module; only the loss hot-path is a Pallas kernel.
# ----------------------------------------------------------------------------
def make_model_params(key, feat_dim, emb_dim):
    kw, kb = jax.random.split(key)
    w = jax.random.normal(kw, (feat_dim, emb_dim), jnp.float32) * 0.05
    b = jax.random.normal(kb, (emb_dim,), jnp.float32) * 0.01
    return w, b


def model_apply(params, sentence_feature):
    w, b = params
    return {"multimodal_embedding": sentence_feature["features"] @ w + b}


def reference_loss(images, captions, scale):
    img_n = images / jnp.maximum(
        jnp.linalg.norm(images, axis=-1, keepdims=True), 1e-12)
    cap_n = captions / jnp.maximum(
        jnp.linalg.norm(captions, axis=-1, keepdims=True), 1e-12)
    scores = img_n @ cap_n.T * scale
    labels = jnp.arange(scores.shape[0])
    logp = jax.nn.log_softmax(scores, axis=-1)
    return -jnp.mean(logp[jnp.arange(scores.shape[0]), labels])


if __name__ == "__main__":
    key = jax.random.PRNGKey(0)
    k_model, k1, k2, k3 = jax.random.split(key, 4)

    batch = 8        # number of images
    feat_dim = 32    # raw input feature dim
    emb_dim = 32     # multimodal embedding dim
    scale = 20.0

    params = make_model_params(k_model, feat_dim, emb_dim)

    # Triplet: two caption feature sets + one image feature set.
    sentence_features = [
        {"features": jax.random.normal(k1, (batch, feat_dim), jnp.float32)},
        {"features": jax.random.normal(k2, (batch, feat_dim), jnp.float32)},
        {"features": jax.random.normal(k3, (batch, feat_dim), jnp.float32)},
    ]

    reps = [model_apply(params, f)["multimodal_embedding"]
            for f in sentence_features]
    captions = jnp.concatenate(reps[:-1], axis=0)   # [2*batch, emb_dim]
    images = reps[-1]                               # [batch,   emb_dim]

    # Single-tile case (no padding, grid = (1, 1)).
    loss = jax.block_until_ready(ntxent_loss_triplet(images, captions, scale=scale))
    ref = reference_loss(images, captions, scale)
    assert jnp.allclose(loss, ref, rtol=1e-4, atol=1e-4), (loss, ref)

    # Multi-tile online-LSE case (caption axis split into two tiles).
    loss2 = jax.block_until_ready(
        ntxent_loss_triplet(images, captions, scale=scale, block_m=8))
    assert jnp.allclose(loss2, ref, rtol=1e-4, atol=1e-4), (loss2, ref)

    # Padded-column (masking) case: M = 13 not a multiple of the tile.
    caps13 = captions[:13]
    loss3 = jax.block_until_ready(
        ntxent_loss_triplet(images, caps13, scale=scale))
    ref3 = reference_loss(images, caps13, scale)
    assert jnp.allclose(loss3, ref3, rtol=1e-4, atol=1e-4), (loss3, ref3)

    print("KERNEL_OK")
</pallas_src>

<mosaic_0001>
module attributes {stable_mosaic.version = 11 : i64} {
  func.func @_ntxent_kernel(%arg0: i32, %arg1: i32, %arg2: memref<8x32xf32, #tpu.memory_space<vmem>>, %arg3: memref<16x32xf32, #tpu.memory_space<vmem>>, %arg4: memref<8x32xf32, #tpu.memory_space<vmem>>, %arg5: memref<8x1xf32, #tpu.memory_space<vmem>>, %arg6: memref<8x32xf32, #tpu.memory_space<vmem>>, %arg7: memref<8x1xf32, #tpu.memory_space<vmem>>, %arg8: memref<8x1xf32, #tpu.memory_space<vmem>>, %arg9: memref<8x1xf32, #tpu.memory_space<vmem>>) attributes {dimension_semantics = [#tpu.dimension_semantics<parallel>, #tpu.dimension_semantics<arbitrary>], iteration_bounds = array<i64: 1, 1>, scalar_prefetch = 0 : i64, scratch_operands = 4 : i64, tpu.core_type = #tpu.core_type<tc>, window_params = [{transform_indices = @transform_0, window_bounds = array<i64: 8, 32>}, {transform_indices = @transform_1, window_bounds = array<i64: 16, 32>}, {transform_indices = @transform_2, window_bounds = array<i64: 8, 32>}, {transform_indices = @transform_3, window_bounds = array<i64: 8, 1>}]} {
    %c0_i32 = arith.constant 0 : i32
    %0 = arith.cmpi eq, %arg1, %c0_i32 : i32
    %1 = arith.extui %0 : i1 to i32
    %c0_i32_0 = arith.constant 0 : i32
    %2 = arith.cmpi ne, %1, %c0_i32_0 : i32
    scf.if %2 {
      %c0_18 = arith.constant 0 : index
      %c0_19 = arith.constant 0 : index
      %33 = vector.load %arg2[%c0_18, %c0_19] : memref<8x32xf32, #tpu.memory_space<vmem>>, vector<8x32xf32>
      %c0_20 = arith.constant 0 : index
      %c0_21 = arith.constant 0 : index
      %34 = vector.load %arg4[%c0_20, %c0_21] : memref<8x32xf32, #tpu.memory_space<vmem>>, vector<8x32xf32>
      %35 = arith.mulf %33, %33 : vector<8x32xf32>
      %cst_22 = arith.constant dense<0.000000e+00> : vector<8xf32>
      %36 = vector.multi_reduction <add>, %35, %cst_22 [1] : vector<8x32xf32> to vector<8xf32>
      %37 = vector.shape_cast %36 : vector<8xf32> to vector<8x1xf32>
      %cst_23 = arith.constant 1.000000e-24 : f32
      %38 = vector.broadcast %cst_23 : f32 to vector<8x1xf32>
      %39 = arith.maximumf %37, %38 : vector<8x1xf32>
      %40 = math.rsqrt %39 : vector<8x1xf32>
      %41 = arith.mulf %34, %34 : vector<8x32xf32>
      %cst_24 = arith.constant dense<0.000000e+00> : vector<8xf32>
      %42 = vector.multi_reduction <add>, %41, %cst_24 [1] : vector<8x32xf32> to vector<8xf32>
      %43 = vector.shape_cast %42 : vector<8xf32> to vector<8x1xf32>
      %cst_25 = arith.constant 1.000000e-24 : f32
      %44 = vector.broadcast %cst_25 : f32 to vector<8x1xf32>
      %45 = arith.maximumf %43, %44 : vector<8x1xf32>
      %46 = math.rsqrt %45 : vector<8x1xf32>
      %cst_26 = arith.constant 2.000000e+01 : f32
      %47 = vector.broadcast %cst_26 : f32 to vector<8x1xf32>
      %48 = arith.mulf %40, %47 : vector<8x1xf32>
      %49 = vector.broadcast %48 : vector<8x1xf32> to vector<8x32xf32>
      %50 = arith.mulf %33, %49 : vector<8x32xf32>
      %c0_27 = arith.constant 0 : index
      %c0_28 = arith.constant 0 : index
      %51 = vector.load %arg6[%c0_27, %c0_28] : memref<8x32xf32, #tpu.memory_space<vmem>>, vector<8x32xf32>
      tpu.vector_store %arg6[%c0_27, %c0_28], %50 {strides = array<i32>} : memref<8x32xf32, #tpu.memory_space<vmem>>, vector<8x32xf32>,
      %52 = vector.broadcast %46 : vector<8x1xf32> to vector<8x32xf32>
      %53 = arith.mulf %34, %52 : vector<8x32xf32>
      %54 = arith.mulf %50, %53 : vector<8x32xf32>
      %cst_29 = arith.constant dense<0.000000e+00> : vector<8xf32>
      %55 = vector.multi_reduction <add>, %54, %cst_29 [1] : vector<8x32xf32> to vector<8xf32>
      %56 = vector.shape_cast %55 : vector<8xf32> to vector<8x1xf32>
      %c0_30 = arith.constant 0 : index
      %c0_31 = arith.constant 0 : index
      %57 = vector.load %arg7[%c0_30, %c0_31] : memref<8x1xf32, #tpu.memory_space<vmem>>, vector<8x1xf32>
      tpu.vector_store %arg7[%c0_30, %c0_31], %56 {strides = array<i32>} : memref<8x1xf32, #tpu.memory_space<vmem>>, vector<8x1xf32>,
      %cst_32 = arith.constant -1.000000e+30 : f32
      %58 = vector.broadcast %cst_32 : f32 to vector<8x1xf32>
      %c0_33 = arith.constant 0 : index
      %c0_34 = arith.constant 0 : index
      %59 = vector.load %arg8[%c0_33, %c0_34] : memref<8x1xf32, #tpu.memory_space<vmem>>, vector<8x1xf32>
      tpu.vector_store %arg8[%c0_33, %c0_34], %58 {strides = array<i32>} : memref<8x1xf32, #tpu.memory_space<vmem>>, vector<8x1xf32>,
      %cst_35 = arith.constant 0.000000e+00 : f32
      %60 = vector.broadcast %cst_35 : f32 to vector<8x1xf32>
      %c0_36 = arith.constant 0 : index
      %c0_37 = arith.constant 0 : index
      %61 = vector.load %arg9[%c0_36, %c0_37] : memref<8x1xf32, #tpu.memory_space<vmem>>, vector<8x1xf32>
      tpu.vector_store %arg9[%c0_36, %c0_37], %60 {strides = array<i32>} : memref<8x1xf32, #tpu.memory_space<vmem>>, vector<8x1xf32>,
    } else {
    }
    %c0 = arith.constant 0 : index
    %c0_1 = arith.constant 0 : index
    %3 = vector.load %arg3[%c0, %c0_1] : memref<16x32xf32, #tpu.memory_space<vmem>>, vector<16x32xf32>
    %4 = arith.mulf %3, %3 : vector<16x32xf32>
    %cst = arith.constant dense<0.000000e+00> : vector<16xf32>
    %5 = vector.multi_reduction <add>, %4, %cst [1] : vector<16x32xf32> to vector<16xf32>
    %6 = vector.shape_cast %5 : vector<16xf32> to vector<16x1xf32>
    %cst_2 = arith.constant 1.000000e-24 : f32
    %7 = vector.broadcast %cst_2 : f32 to vector<16x1xf32>
    %8 = arith.maximumf %6, %7 : vector<16x1xf32>
    %9 = math.rsqrt %8 : vector<16x1xf32>
    %10 = vector.broadcast %9 : vector<16x1xf32> to vector<16x32xf32>
    %11 = arith.mulf %3, %10 : vector<16x32xf32>
    %c0_3 = arith.constant 0 : index
    %c0_4 = arith.constant 0 : index
    %12 = vector.load %arg6[%c0_3, %c0_4] : memref<8x32xf32, #tpu.memory_space<vmem>>, vector<8x32xf32>
    %cst_5 = arith.constant dense<0.000000e+00> : vector<8x16xf32>
    %13 = tpu.matmul %12, %11, %cst_5 {dimension_numbers = #tpu.dot_dimension_numbers<[1], [1], [0], [0], [0, 0, 1, 0], [], []>} : vector<8x32xf32>, vector<16x32xf32>, vector<8x16xf32> -> vector<8x16xf32>
    %cst_6 = arith.constant dense<0xFF800000> : vector<8xf32>
    %14 = vector.multi_reduction <maximumf>, %13, %cst_6 [1] : vector<8x16xf32> to vector<8xf32>
    %15 = vector.shape_cast %14 : vector<8xf32> to vector<8x1xf32>
    %c0_7 = arith.constant 0 : index
    %c0_8 = arith.constant 0 : index
    %16 = vector.load %arg8[%c0_7, %c0_8] : memref<8x1xf32, #tpu.memory_space<vmem>>, vector<8x1xf32>
    %17 = arith.maximumf %16, %15 : vector<8x1xf32>
    %18 = arith.subf %16, %17 : vector<8x1xf32>
    %19 = math.exp %18 : vector<8x1xf32>
    %c0_9 = arith.constant 0 : index
    %c0_10 = arith.constant 0 : index
    %20 = vector.load %arg9[%c0_9, %c0_10] : memref<8x1xf32, #tpu.memory_space<vmem>>, vector<8x1xf32>
    %21 = arith.mulf %19, %20 : vector<8x1xf32>
    %22 = vector.broadcast %17 : vector<8x1xf32> to vector<8x16xf32>
    %23 = arith.subf %13, %22 : vector<8x16xf32>
    %24 = math.exp %23 : vector<8x16xf32>
    %cst_11 = arith.constant dense<0.000000e+00> : vector<8xf32>
    %25 = vector.multi_reduction <add>, %24, %cst_11 [1] : vector<8x16xf32> to vector<8xf32>
    %26 = vector.shape_cast %25 : vector<8xf32> to vector<8x1xf32>
    %27 = arith.addf %21, %26 : vector<8x1xf32>
    %c0_12 = arith.constant 0 : index
    %c0_13 = arith.constant 0 : index
    %28 = vector.load %arg9[%c0_12, %c0_13] : memref<8x1xf32, #tpu.memory_space<vmem>>, vector<8x1xf32>
    tpu.vector_store %arg9[%c0_12, %c0_13], %27 {strides = array<i32>} : memref<8x1xf32, #tpu.memory_space<vmem>>, vector<8x1xf32>,
    %c0_14 = arith.constant 0 : index
    %c0_15 = arith.constant 0 : index
    %29 = vector.load %arg8[%c0_14, %c0_15] : memref<8x1xf32, #tpu.memory_space<vmem>>, vector<8x1xf32>
    tpu.vector_store %arg8[%c0_14, %c0_15], %17 {strides = array<i32>} : memref<8x1xf32, #tpu.memory_space<vmem>>, vector<8x1xf32>,
    %c0_i32_16 = arith.constant 0 : i32
    %30 = arith.cmpi eq, %arg1, %c0_i32_16 : i32
    %31 = arith.extui %30 : i1 to i32
    %c0_i32_17 = arith.constant 0 : i32
    %32 = arith.cmpi ne, %31, %c0_i32_17 : i32
    scf.if %32 {
      %c0_18 = arith.constant 0 : index
      %c0_19 = arith.constant 0 : index
      %33 = vector.load %arg8[%c0_18, %c0_19] : memref<8x1xf32, #tpu.memory_space<vmem>>, vector<8x1xf32>
      %c0_20 = arith.constant 0 : index
      %c0_21 = arith.constant 0 : index
      %34 = vector.load %arg9[%c0_20, %c0_21] : memref<8x1xf32, #tpu.memory_space<vmem>>, vector<8x1xf32>
      %35 = math.log %34 : vector<8x1xf32>
      %36 = arith.addf %33, %35 : vector<8x1xf32>
      %c0_22 = arith.constant 0 : index
      %c0_23 = arith.constant 0 : index
      %37 = vector.load %arg7[%c0_22, %c0_23] : memref<8x1xf32, #tpu.memory_space<vmem>>, vector<8x1xf32>
      %38 = arith.subf %36, %37 : vector<8x1xf32>
      %c0_24 = arith.constant 0 : index
      %c0_25 = arith.constant 0 : index
      %39 = vector.load %arg5[%c0_24, %c0_25] : memref<8x1xf32, #tpu.memory_space<vmem>>, vector<8x1xf32>
      tpu.vector_store %arg5[%c0_24, %c0_25], %38 {strides = array<i32>} : memref<8x1xf32, #tpu.memory_space<vmem>>, vector<8x1xf32>,
    } else {
    }
    return
  }
  func.func @transform_0(%arg0: i32, %arg1: i32) -> (i32, i32) {
    %c0_i32 = arith.constant 0 : i32
    %c0_i32_0 = arith.constant 0 : i32
    return %arg0, %c0_i32 : i32, i32
  }
  func.func @transform_1(%arg0: i32, %arg1: i32) -> (i32, i32) {
    %c0_i32 = arith.constant 0 : i32
    %c0_i32_0 = arith.constant 0 : i32
    return %arg1, %c0_i32 : i32, i32
  }
  func.func @transform_2(%arg0: i32, %arg1: i32) -> (i32, i32) {
    %c0_i32 = arith.constant 0 : i32
    %c0_i32_0 = arith.constant 0 : i32
    return %arg0, %c0_i32 : i32, i32
  }
  func.func @transform_3(%arg0: i32, %arg1: i32) -> (i32, i32) {
    %c0_i32 = arith.constant 0 : i32
    %c0_i32_0 = arith.constant 0 : i32
    return %arg0, %c0_i32 : i32, i32
  }
}

</mosaic_0001>

<bundles_post_ra>
// kernel: tpu_custom_call.1
= control target key start
LH: loop header
LB: loop body
LE: loop exit
PB: predicated region body
PF: predicated region fallthrough
CT: control target
= control target key end

     0   :  { %8 = vsyncpa [#allocation7], 0  ;;  %s420_s0 = inlined_call_operand.hbm [shape: f32[8,32], index: 0, kind: input, shape index: {}]   ;;  %s421_s1 = inlined_call_operand.hbm [shape: f32[16,32], index: 1, kind: input, shape index: {}]   ;;  %s422_s2 = inlined_call_operand.hbm [shape: f32[8,32], index: 2, kind: input, shape index: {}]   ;;  %s423_s3 = inlined_call_operand.vmem [shape: f32[8,1], index: 3, kind: output, shape index: {}]  }
   0x1   :  { %9 = vsyncpa [#allocation9], 0  ;;  %s334_s12 = smov [#allocation8]   ;;  %s264_s16 = scalar_lea.hbm %s421_s1, 256 }
   0x2   :  { %s25_s13 = sshll.u32 %s334_s12, 4  ;;  %p265_p0 = scmp.ne.s32.totalorder %s421_s1, %s264_s16  ;;  %s26_s13 = int_to_ptr.vmem [resolvable:$true] %s25_s13 }
   0x3   :  { %p268_p1 = scmp.lt.u32.totalorder %s264_s16, %s421_s1 }
   0x5   :  { %p270_p2 = pnand %p268_p1, %p265_p0 }
   0x7   :  { %273 = shalt.err (!%p270_p2)
}
   0x8   :  { %s274_s21 = scalar_lea.vmem %s26_s13, 256  ;;  %p279_p4 = scmp.lt.s32.totalorder %s26_s13, %s26_s13 }
   0x9   :  { %p275_p3 = scmp.ne.s32.totalorder %s26_s13, %s274_s21  ;;  %p280_p5 = scmp.lt.s32.totalorder %s274_s21, %s274_s21 }
   0xb   :  { %p281_p6 = por %p280_p5, %p279_p4 }
   0xd   :  { %p282_p7 = pnand %p281_p6, %p275_p3 }
   0xf   :  { %285 = shalt.err (!%p282_p7)
}
  0x10   :  { %s335_s22 = smov 128   ;;  %s336_s23 = smov 8  }
  0x11   :  { %31 = dma.hbm_to_vmem [thread:$0]  %s421_s1, 256, %s26_s13, [#allocation9], %s335_s22, %s335_s22, %s336_s23  }
  0x12   :  { %s337_s26 = smov [#allocation6]   ;;  %s338_s28 = smov [#allocation10]  }
  0x13   :  { %s16_s27 = sshll.u32 %s337_s26, 4  ;;  %s38_s29 = sshll.u32 %s338_s28, 4  ;;  %s17_s27 = int_to_ptr.vmem [resolvable:$true] %s16_s27  ;;  %s39_s29 = int_to_ptr.vmem [resolvable:$true] %s38_s29 }
  0x14   :  { %s286_s5 = scalar_lea.hbm %s420_s0, 128 }
  0x15   :  { %p287_p8 = scmp.ne.s32.totalorder %s420_s0, %s286_s5  ;;  %p290_p9 = scmp.lt.u32.totalorder %s286_s5, %s420_s0 }
  0x17   :  { %p292_p10 = pnand %p290_p9, %p287_p8 }
  0x19   :  { %295 = shalt.err (!%p292_p10)
}
  0x1a   :  { %s296_s1 = scalar_lea.vmem %s17_s27, 128  ;;  %p301_p12 = scmp.lt.s32.totalorder %s17_s27, %s17_s27 }
  0x1b   :  { %p297_p11 = scmp.ne.s32.totalorder %s17_s27, %s296_s1  ;;  %p302_p13 = scmp.lt.s32.totalorder %s296_s1, %s296_s1 }
  0x1d   :  { %p303_p0 = por %p302_p13, %p301_p12 }
  0x1f   :  { %p304_p1 = pnand %p303_p0, %p297_p11 }
  0x21   :  { %307 = shalt.err (!%p304_p1)
}
  0x22   :  { %19 = dma.hbm_to_vmem [thread:$0]  %s420_s0, 128, %s17_s27, [#allocation7]  }
  0x23   :  { %s308_s14 = scalar_lea.hbm %s422_s2, 128 }
  0x24   :  { %p309_p2 = scmp.ne.s32.totalorder %s422_s2, %s308_s14  ;;  %p312_p3 = scmp.lt.u32.totalorder %s308_s14, %s422_s2 }
  0x26   :  { %p314_p4 = pnand %p312_p3, %p309_p2 }
  0x28   :  { %317 = shalt.err (!%p314_p4)
}
  0x29   :  { %s318_s19 = scalar_lea.vmem %s39_s29, 128  ;;  %p323_p6 = scmp.lt.s32.totalorder %s39_s29, %s39_s29 }
  0x2a   :  { %p319_p5 = scmp.ne.s32.totalorder %s39_s29, %s318_s19  ;;  %p324_p7 = scmp.lt.s32.totalorder %s318_s19, %s318_s19 }
  0x2c   :  { %p325_p8 = por %p324_p7, %p323_p6 }
  0x2e   :  { %p326_p9 = pnand %p325_p8, %p319_p5 }
  0x30   :  { %329 = shalt.err (!%p326_p9)
}
  0x31   :  { %41 = dma.hbm_to_vmem [thread:$0]  %s422_s2, 128, %s39_s29, [#allocation9]  }
  0x32   :  { %330 = dma.done.wait [#allocation7], 128  }
  0x33   :  { %331 = vsyncadd [#allocation7], 4294967168 }
  0x34   :  { %332 = dma.done.wait [#allocation9], 384  }
  0x35   :  { %333 = vsyncadd [#allocation9], 4294966912  ;;  %v55_v0 = vld [vmem:[#allocation6] sm:$0xff]  ;;  %vm58_vm0 = vcmask 261120   ;;  %v83_v1 = vld [vmem:[#allocation8 + $0x8] sm:$0xff]  ;;  %v339_v9 = vmov 0.0|0.0  }
  0x36   :  { %v82_v2 = vld [vmem:[#allocation8] sm:$0xff]  ;;  %v57_v3 = vmul.f32 %v55_v0, %v55_v0  ;;  %v85_v4 = vmul.f32 %v83_v1, %v83_v1  ;;  %235 = vmatprep.subr.bf16.mxu0 %v339_v9  ;;  %vm78_vm1 = vcmask 7168   ;;  %v340_v10 = vmov 0.0   ;;  %vm237_vm3 = vmpackc.low %vm58_vm0, %vm58_vm0  ;;  %v56_v27 = vld [vmem:[#allocation10] sm:$0xff] }
  0x37   :  { %v84_v5 = vmul.f32 %v82_v2, %v82_v2  ;;  %81 = vst.msk [vmem:[#allocation5] sm:$0xff] %vm78_vm1, %v340_v10  ;;  %vm341_vm2 = vmmov 0   ;;  %v342_v26 = vmov -1e+30   ;;  %vm179_vm4 = vcmask 130048  }
  0x38   :  { %v59_v6 = vsel %vm58_vm0, %v57_v3, 0.0  ;;  %v90_v7 = vsel %vm58_vm0, %v85_v4, 0.0  ;;  %232 = vmatprep.mubr.msk.f32.mxu0 %vm341_vm2, %v340_v10  ;;  %80 = vst.msk [vmem:[#allocation4] sm:$0xff] %vm78_vm1, %v342_v26  ;;  %v64_v28 = vmul.f32 %v56_v27, %v56_v27  ;;  %v343_v33 = vmov 0  }
  0x39   :  { %60 = vadd.xlane.f32.xlu0 %v59_v6  ;;  %91 = vadd.xlane.f32.xlu1 %v90_v7  ;;  %v87_v8 = vsel %vm58_vm0, %v84_v5, 0.0 }
  0x3a   :  { %v65_v32 = vsel %vm58_vm0, %v64_v28, 0.0  ;;  %249 = vset.pattern.permute.xlu0 %v343_v33 }
  0x3d   :  { %88 = vadd.xlane.f32.xlu0 %v87_v8 }
  0x3e   :  { %v188_v51 = vld [vmem:[#allocation5] sm:$0xff] }
  0x3f   :  { %v183_v34 = vld [vmem:[#allocation4] sm:$0xff] }
  0xc6   :  { %v61_v11 = vpop.xlane.xlu0 %60  ;;  %v92_v12 = vpop.xlane.xlu1 %91 }
  0xc7   :  { %v62_v13 = vmax.f32 %v61_v11, 1e-24  ;;  %v94_v14 = vmax.f32 %v92_v12, 1e-24 }
  0xc9   :  { %250 = vrsqrt.f32 %v62_v13 }
  0xca   :  { %252 = vrsqrt.f32 %v94_v14  ;;  %v89_v15 = vpop.xlane.xlu0 %88 }
  0xcb   :  { %v93_v16 = vmax.f32 %v89_v15, 1e-24 }
  0xcd   :  { %254 = vrsqrt.f32 %v93_v16 }
  0xd3   :  { %v251_v17 = vpop.eup %250 }
  0xd4   :  { %v253_v18 = vpop.eup %252  ;;  %v70_v19 = vmul.f32 20.0, %v251_v17 }
  0xd5   :  { %v98_v21 = vmul.f32 %v253_v18, %v83_v1 }
  0xd6   :  { %v71_v20 = vmul.f32 %v70_v19, %v55_v0 }
  0xd7   :  { %v255_v22 = vpop.eup %254 }
  0xd8   :  { %72 = vst.msk [vmem:[#allocation2] sm:$0xff] %vm58_vm0, %v71_v20  ;;  %v97_v23 = vmul.f32 %v255_v22, %v82_v2 }
  0xda   :  { %v236_v24 = vpack.c.bf16 %v98_v21, %v97_v23 }
  0xdc   :  { %238 = vmatpush3.bf16.xpose.msk.msra.mxu0 %vm237_vm3, %v236_v24 }
  0xdf   :  { %v99_v25 = vld [vmem:[#allocation2] sm:$0xff] }
  0xe3   :  { %233 = vmatmul.mubr.msk.f32.vlgmr.msra.gmra.mrb[0].mxu0 %vm58_vm0, %v99_v25 }
 0x1b6   :  { %v175_v29 = vpop.f32.mrb[0].mxu0 }
 0x1b7   :  { %v234_v30 = vpop.f32.mrb[1].mxu0  ;;  %v180_v31 = vsel %vm179_vm4, %v175_v29, -inf }
 0x1b8   :  { %181 = vmax.xlane.f32.xlu1 %v180_v31 }
 0x1bc   :  { %66 = vadd.xlane.f32.xlu1 %v65_v32 }
 0x245   :  { %v182_v35 = vpop.xlane.xlu1 %181 }
 0x246   :  { %v184_v36 = vmax.f32 %v183_v34, %v182_v35 }
 0x248   :  { %v185_v37 = vsub.f32 %v183_v34, %v184_v36  ;;  %204 = vst.msk [vmem:[#allocation4] sm:$0xff] %vm78_vm1, %v184_v36  ;;  %192 = vperm.xlu0 %249, %v184_v36  }
 0x249   :  { %v67_v38 = vpop.xlane.xlu1 %66 }
 0x24a   :  { %v68_v39 = vmax.f32 %v67_v38, 1e-24  ;;  %v186_v49 = vmul.f32 1.442695, %v185_v37 }
 0x24c   :  { %256 = vrsqrt.f32 %v68_v39 }
 0x24f   :  { %v208_v59 = vld [vmem:[#allocation4] sm:$0xff] }
 0x256   :  { %v257_v43 = vpop.eup %256 }
 0x257   :  { %v73_v44 = vmul.f32 %v257_v43, %v56_v27 }
 0x259   :  { %v74_v47 = vmul.f32 %v73_v44, %v71_v20 }
 0x25b   :  { %v75_v48 = vsel %vm58_vm0, %v74_v47, 0.0 }
 0x2c7   :  { %v193_v40 = vpop.permute.xlu0 %192 }
 0x2c8   :  { %v195_v41 = vsub.f32 %v175_v29, %v193_v40 }
 0x2ca   :  { %v196_v42 = vmul.f32 1.442695, %v195_v41 }
 0x2cc   :  { %258 = vpow2.f32 %v196_v42 }
 0x2cd   :  { %260 = vpow2.f32 %v186_v49 }
 0x2d6   :  { %v259_v45 = vpop.eup %258 }
 0x2d7   :  { %v198_v46 = vsel %vm179_vm4, %v259_v45, 0.0  ;;  %v261_v50 = vpop.eup %260 }
 0x2d8   :  { %199 = vadd.xlane.f32.xlu1 %v198_v46  ;;  %v189_v52 = vmul.f32 %v261_v50, %v188_v51 }
 0x2dc   :  { %76 = vadd.xlane.f32.xlu1 %v75_v48 }
 0x365   :  { %v200_v53 = vpop.xlane.xlu1 %199 }
 0x366   :  { %v201_v54 = vadd.f32 %v200_v53, %v189_v52 }
 0x368   :  { %203 = vst.msk [vmem:[#allocation5] sm:$0xff] %vm78_vm1, %v201_v54 }
 0x369   :  { %v77_v55 = vpop.xlane.xlu1 %76 }
 0x36a   :  { %79 = vst.msk [vmem:[#allocation3] sm:$0xff] %vm78_vm1, %v77_v55 }
 0x36f   :  { %v209_v56 = vld [vmem:[#allocation5] sm:$0xff] }
 0x370   :  { %262 = vlog2.f32 %v209_v56 }
 0x371   :  { %v213_v61 = vld [vmem:[#allocation3] sm:$0xff] }
 0x37a   :  { %v263_v57 = vpop.eup %262 }
 0x37b   :  { %v211_v58 = vmul.f32 0.6931472, %v263_v57 }
 0x37d   :  { %v212_v60 = vadd.f32 %v211_v58, %v208_v59 }
 0x37f   :  { %v214_v62 = vsub.f32 %v212_v60, %v213_v61 }
 0x381   :  { %215 = vst.msk [vmem:[%s423_s3] sm:$0xff] %vm78_vm1, %v214_v62 }
 0x382   :  { %220 = vsyncpa [#allocation7], 1 }
 0x383   :  { %221 = vsyncpa [#allocation9], 1 }

</bundles_post_ra>
